<compile_context>
chip_gen: v6e
topology: v6e:2x2x1
jax: 0.10.0
libtpu: 0.0.40
codegen_flags: <defaults>
</compile_context>

<pallas_src>
import math
import functools

import jax
import jax.numpy as jnp
from jax.experimental import pallas as pl
from jax.experimental.pallas import tpu as pltpu


def _sinusoidal_pos_emb_kernel(x_ref, f_ref, o_ref, *, tb, half_dim):
    # x_ref: (B_pad, 1) f32, resident across the whole grid (constant index_map)
    # f_ref: (1, half_dim) f32, resident frequency table
    # o_ref: (tb, dim)  output tile for this grid step
    i = pl.program_id(0)
    row0 = pl.multiple_of(i * tb, tb)
    x = x_ref[pl.ds(row0, tb), :]          # (tb, 1)
    arg = x * f_ref[...]                   # (tb, half_dim) via broadcast
    # Direct two-half stores — no concatenate temp, no extra VMEM pass.
    o_ref[:, :half_dim] = jnp.sin(arg).astype(o_ref.dtype)
    o_ref[:, half_dim:] = jnp.cos(arg).astype(o_ref.dtype)


def sinusoidal_pos_emb(x, dim, *, block_rows=512, out_dtype=jnp.float32):
    """JAX/Pallas equivalent of SinusoidalPosEmb(dim).forward(x)."""
    assert x.ndim == 1, "expects a 1-D batch of timesteps"
    assert dim % 2 == 0, "dim must be even (same implicit assumption as the torch module)"
    half_dim = dim // 2
    assert half_dim > 1, "dim must be >= 4 (half_dim - 1 appears in a denominator)"
    B = x.shape[0]

    # Frequency table, computed once on the host side of the pallas_call.
    emb_scale = math.log(10000.0) / (half_dim - 1)
    freqs = jnp.exp(
        jnp.arange(half_dim, dtype=jnp.float32) * (-emb_scale)
    ).reshape(1, half_dim)

    # Batch tile: multiple of 8 sublanes, capped at block_rows.
    tb = min(block_rows, B)
    tb = max(8, (tb // 8) * 8)
    n_tiles = pl.cdiv(B, tb)
    B_pad = n_tiles * tb

    x2 = x.astype(jnp.float32).reshape(B, 1)
    if B_pad != B:
        x2 = jnp.pad(x2, ((0, B_pad - B), (0, 0)))

    kernel = functools.partial(
        _sinusoidal_pos_emb_kernel, tb=tb, half_dim=half_dim
    )

    out = pl.pallas_call(
        kernel,
        out_shape=jax.ShapeDtypeStruct((B_pad, dim), out_dtype),
        grid=(n_tiles,),
        in_specs=[
            # x stays resident: full block, constant index_map -> loaded once.
            pl.BlockSpec((B_pad, 1), lambda i: (0, 0)),
            # freqs table resident across all grid steps.
            pl.BlockSpec((1, half_dim), lambda i: (0, 0)),
        ],
        out_specs=pl.BlockSpec((tb, dim), lambda i: (i, 0)),
        compiler_params=pltpu.CompilerParams(
            dimension_semantics=("parallel",),
        ),
    )(x2, freqs)

    return out[:B] if B_pad != B else out


def _reference(x, dim):
    half_dim = dim // 2
    emb = math.log(10000.0) / (half_dim - 1)
    emb = jnp.exp(jnp.arange(half_dim, dtype=jnp.float32) * -emb)
    emb = x.astype(jnp.float32)[:, None] * emb[None, :]
    return jnp.concatenate([jnp.sin(emb), jnp.cos(emb)], axis=-1)


if __name__ == "__main__":
    key = jax.random.PRNGKey(0)
    B, dim = 8, 32
    # Timesteps in a diffusion-like range, deterministic.
    x = jax.random.uniform(key, (B,), dtype=jnp.float32, minval=0.0, maxval=1000.0)

    out = sinusoidal_pos_emb(x, dim)
    out = jax.block_until_ready(out)

    ref = _reference(x, dim)
    assert out.shape == (B, dim)
    assert jnp.allclose(out, ref, atol=1e-5, rtol=1e-5)

    print("KERNEL_OK")
</pallas_src>

<mosaic_0001>
module attributes {stable_mosaic.version = 11 : i64} {
  func.func @_sinusoidal_pos_emb_kernel(%arg0: i32, %arg1: memref<8x1xf32, #tpu.memory_space<vmem>>, %arg2: memref<1x16xf32, #tpu.memory_space<vmem>>, %arg3: memref<8x32xf32, #tpu.memory_space<vmem>>) attributes {dimension_semantics = [#tpu.dimension_semantics<parallel>], iteration_bounds = array<i64: 1>, scalar_prefetch = 0 : i64, scratch_operands = 0 : i64, tpu.core_type = #tpu.core_type<tc>, window_params = [{pipeline_mode = #tpu.pipeline_mode<synchronous>, transform_indices = @transform_0, window_bounds = array<i64: 8, 1>}, {pipeline_mode = #tpu.pipeline_mode<synchronous>, transform_indices = @transform_1, window_bounds = array<i64: 1, 16>}, {transform_indices = @transform_2, window_bounds = array<i64: 8, 32>}]} {
    %c8_i32 = arith.constant 8 : i32
    %0 = arith.muli %arg0, %c8_i32 : i32
    %1 = tpu.assume_multiple %0, 8 : i32
    %2 = arith.index_cast %1 : i32 to index
    %c0 = arith.constant 0 : index
    %3 = vector.load %arg1[%2, %c0] : memref<8x1xf32, #tpu.memory_space<vmem>>, vector<8x1xf32>
    %c0_0 = arith.constant 0 : index
    %c0_1 = arith.constant 0 : index
    %4 = vector.load %arg2[%c0_0, %c0_1] : memref<1x16xf32, #tpu.memory_space<vmem>>, vector<1x16xf32>
    %5 = vector.broadcast %3 : vector<8x1xf32> to vector<8x16xf32>
    %6 = vector.broadcast %4 : vector<1x16xf32> to vector<8x16xf32>
    %7 = arith.mulf %5, %6 : vector<8x16xf32>
    %8 = math.sin %7 : vector<8x16xf32>
    %c0_2 = arith.constant 0 : index
    %c0_3 = arith.constant 0 : index
    %9 = vector.load %arg3[%c0_2, %c0_3] : memref<8x32xf32, #tpu.memory_space<vmem>>, vector<8x16xf32>
    tpu.vector_store %arg3[%c0_2, %c0_3], %8 {strides = array<i32>} : memref<8x32xf32, #tpu.memory_space<vmem>>, vector<8x16xf32>,
    %10 = math.cos %7 : vector<8x16xf32>
    %c0_4 = arith.constant 0 : index
    %c16 = arith.constant 16 : index
    %11 = vector.load %arg3[%c0_4, %c16] : memref<8x32xf32, #tpu.memory_space<vmem>>, vector<8x16xf32>
    tpu.vector_store %arg3[%c0_4, %c16], %10 {strides = array<i32>} : memref<8x32xf32, #tpu.memory_space<vmem>>, vector<8x16xf32>,
    return
  }
  func.func @transform_0(%arg0: i32) -> (i32, i32) {
    %c0_i32 = arith.constant 0 : i32
    %c0_i32_0 = arith.constant 0 : i32
    %c0_i32_1 = arith.constant 0 : i32
    return %c0_i32, %c0_i32_0 : i32, i32
  }
  func.func @transform_1(%arg0: i32) -> (i32, i32) {
    %c0_i32 = arith.constant 0 : i32
    %c0_i32_0 = arith.constant 0 : i32
    %c0_i32_1 = arith.constant 0 : i32
    return %c0_i32, %c0_i32_0 : i32, i32
  }
  func.func @transform_2(%arg0: i32) -> (i32, i32) {
    %c0_i32 = arith.constant 0 : i32
    %c0_i32_0 = arith.constant 0 : i32
    return %arg0, %c0_i32 : i32, i32
  }
}

</mosaic_0001>

<bundles_post_ra>
// kernel: tpu_custom_call.1
= control target key start
LH: loop header
LB: loop body
LE: loop exit
PB: predicated region body
PF: predicated region fallthrough
CT: control target
= control target key end

     0   :  { %v306_v1 = vmov 0   ;;  %s361_s0 = inlined_call_operand.vmem [shape: f32[8,1], index: 0, kind: input, shape index: {}]   ;;  %s362_s1 = inlined_call_operand.vmem [shape: f32[1,16], index: 1, kind: input, shape index: {}]   ;;  %s363_s2 = inlined_call_operand.hbm [shape: f32[8,32], index: 2, kind: output, shape index: {}]  }
   0x1   :  { %v14_v0 = vld [vmem:[%s361_s0] sm:$0xff]  ;;  %279 = vset.pattern.permute.xlu0 %v306_v1 }
   0x2   :  { %18 = vperm.xlu0 %279, %v14_v0  }
   0x3   :  { %7 = vsyncpa [#allocation3], 0  ;;  %v257_v2 = vld [vmem:[%s362_s1] ss:$0 sm:$0xff]  ;;  %v307_v15 = vmov 683565275  }
   0x4   :  { %v308_v17 = vmov 2475754826   ;;  %v309_v20 = vmov 2131351028   ;;  %v310_v23 = vmov 2102212464  }
   0x5   :  { %v311_v26 = vmov 920167782   ;;  %v312_v29 = vmov 1326507024   ;;  %vm132_vm11 = vcmask 130048   ;;  %s313_s0 = smov 16  }
   0x6   :  { %s314_s1 = smov [#allocation2]  }
   0x7   :  { %s249_s13 = sshll.u32 %s314_s1, 4  ;;  %s250_s13 = int_to_ptr.vmem [resolvable:$true] %s249_s13 }
   0x8   :  { %s284_s14 = scalar_lea.vmem %s250_s13, 128  ;;  %p289_p1 = scmp.lt.s32.totalorder %s250_s13, %s250_s13 }
   0x9   :  { %p285_p0 = scmp.ne.s32.totalorder %s250_s13, %s284_s14  ;;  %p290_p2 = scmp.lt.s32.totalorder %s284_s14, %s284_s14 }
   0xb   :  { %p291_p3 = por %p290_p2, %p289_p1 }
   0xd   :  { %p292_p4 = pnand %p291_p3, %p285_p0 }
  0x7d   :  { %v19_v3 = vpop.permute.xlu0 %18 }
  0x7e   :  { %v336_v4 = vmul.f32 %v257_v2, %v19_v3 }
  0x80   :  { %v31_v5 = vand.u32 2139095040, %v336_v4  ;;  %v28_v9 = vand.u32 2147483647, %v336_v4  ;;  %vm30_vm7 = vcmp.lt.s32.totalorder %v336_v4, 0 }
  0x82   :  { %v32_v6 = vshrl.u32 %v31_v5, 23  ;;  %v35_v12 = vand.u32 8388607, %v28_v9  ;;  %vm29_vm8 = vcmp.le.f32.partialorder %v28_v9, 0.7853982 }
  0x84   :  { %v258_v7 = vadd.s32 4294967169, %v32_v6  ;;  %v36_v31 = vor.u32 8388608, %v35_v12 }
  0x86   :  { %v38_v8 = vadd.s32 1, %v258_v7  ;;  %v76_v45 = vshll.u32 %v36_v31, 8 }
  0x88   :  { %vm39_vm0 = vcmp.gt.s32.totalorder %v38_v8, 0 }
  0x89   :  { %v40_v10 = vsel %vm39_vm0, %v38_v8, 0  ;;  %vm120_vm0 = vweird.f32 %v336_v4 }
  0x8a   :  { %v42_v11 = vand.u32 31, %v40_v10  ;;  %v41_v14 = vshrl.u32 %v40_v10, 5 }
  0x8c   :  { %v43_v13 = vsub.s32 32, %v42_v11  ;;  %v45_v16 = vshll.u32 %v307_v15, %v42_v11  ;;  %v48_v18 = vshll.u32 %v308_v17, %v42_v11  ;;  %v51_v22 = vshll.u32 %v309_v20, %v42_v11 }
  0x8d   :  { %v54_v25 = vshll.u32 %v310_v23, %v42_v11  ;;  %v57_v28 = vshll.u32 %v311_v26, %v42_v11  ;;  %vm60_vm1 = vcmp.lt.s32.totalorder %v41_v14, 1  ;;  %vm63_vm2 = vcmp.lt.s32.totalorder %v41_v14, 4 }
  0x8e   :  { %v46_v19 = vshrl.u32 %v308_v17, %v43_v13  ;;  %v49_v21 = vshrl.u32 %v309_v20, %v43_v13  ;;  %v52_v24 = vshrl.u32 %v310_v23, %v43_v13  ;;  %v55_v27 = vshrl.u32 %v311_v26, %v43_v13 }
  0x8f   :  { %v58_v30 = vshrl.u32 %v312_v29, %v43_v13  ;;  %v44_v40 = vshrl.u32 %v307_v15, %v43_v13  ;;  %vm62_vm3 = vcmp.lt.s32.totalorder %v41_v14, 3  ;;  %vm61_vm4 = vcmp.lt.s32.totalorder %v41_v14, 2 }
  0x90   :  { %v47_v32 = vor.u32 %v46_v19, %v45_v16  ;;  %v50_v33 = vor.u32 %v49_v21, %v48_v18  ;;  %v53_v34 = vor.u32 %v52_v24, %v51_v22  ;;  %v56_v35 = vor.u32 %v55_v27, %v54_v25 }
  0x91   :  { %v59_v36 = vor.u32 %v58_v30, %v57_v28 }
  0x92   :  { %v65_v37 = vsel %vm63_vm2, %v53_v34, 2102212464  ;;  %v68_v38 = vsel %vm60_vm1, %v47_v32, %v50_v33  ;;  %v72_v39 = vsel %vm60_vm1, %v50_v33, %v53_v34  ;;  %v69_v41 = vsel %vm63_vm2, %v56_v35, 920167782 }
  0x93   :  { %v73_v42 = vsel %vm63_vm2, %v59_v36, 1326507024  ;;  %v70_v43 = vsel %vm62_vm3, %v53_v34, %v69_v41  ;;  %v64_v46 = vsel %vm60_vm1, %v44_v40, %v47_v32  ;;  %v66_v47 = vsel %vm62_vm3, %v50_v33, %v65_v37 }
  0x94   :  { %v74_v44 = vsel %vm62_vm3, %v56_v35, %v73_v42  ;;  %v71_v48 = vsel %vm61_vm4, %v68_v38, %v70_v43  ;;  %v67_v54 = vsel %vm61_vm4, %v64_v46, %v66_v47  ;;  %vm241_vm1 = vcmask 261248  }
  0x95   :  { %v75_v49 = vsel %vm61_vm4, %v72_v39, %v74_v44  ;;  %v345_v52 = vmul.u32.u64.low %v76_v45, %v71_v48  ;;  %v346_v53 = vmul.u32.u64.high %v76_v45, %v71_v48, %v345_v52  ;;  %v83_v56 = vmul.u32 %v76_v45, %v67_v54 }
  0x96   :  { %v342_v50 = vmul.u32.u64.low %v76_v45, %v75_v49  ;;  %v343_v51 = vmul.u32.u64.high %v76_v45, %v75_v49, %v342_v50 }
  0x97   :  { %v86_v55 = vadd.s32 1, %v346_v53 }
  0x98   :  { %vm85_vm5 = vc.u32 %v343_v51, %v345_v52  ;;  %v84_v5 = vadd.s32 %v345_v52, %v343_v51 }
  0x99   :  { %v87_v57 = vsel %vm85_vm5, %v86_v55, %v346_v53 }
  0x9a   :  { %v88_v58 = vadd.s32 %v87_v57, %v83_v56 }
  0x9c   :  { %v89_v59 = vadd.s32 536870912, %v88_v58 }
  0x9e   :  { %v90_v60 = vshrl.u32 %v89_v59, 30 }
  0xa0   :  { %v91_v61 = vshll.u32 %v90_v60, 30  ;;  %v114_v19 = vsub.s32 4, %v90_v60 }
  0xa2   :  { %v92_v62 = vsub.s32 %v88_v58, %v91_v61  ;;  %v115_v22 = vsel %vm30_vm7, %v114_v19, %v90_v60 }
  0xa3   :  { %v117_v23 = vsel %vm29_vm8, 0, %v115_v22 }
  0xa4   :  { %v94_v63 = vsub.s32 0, %v92_v62  ;;  %v121_v24 = vadd.s32 3, %v117_v23  ;;  %v227_v26 = vand.u32 3, %v117_v23 }
  0xa6   :  { %v259_v0 = vmin.u32 %v94_v63, %v92_v62  ;;  %v122_v25 = vand.u32 3, %v121_v24  ;;  %vm232_vm10 = vcmp.eq.s32.totalorder %v227_v26, 2  ;;  %vm229_vm13 = vcmp.eq.s32.totalorder %v227_v26, 0 }
  0xa7   :  { %vm228_vm15 = vcmp.lt.s32.totalorder %v227_v26, 2 }
  0xa8   :  { %v96_v1 = vclz %v259_v0  ;;  %vm127_vm9 = vcmp.eq.s32.totalorder %v122_v25, 2  ;;  %vm124_vm12 = vcmp.eq.s32.totalorder %v122_v25, 0  ;;  %vm123_vm14 = vcmp.lt.s32.totalorder %v122_v25, 2 }
  0xaa   :  { %v260_v2 = vadd.s32 4294967294, %v96_v1 }
  0xac   :  { %vm261_vm6 = vcmp.lt.s32.totalorder %v260_v2, 0 }
  0xad   :  { %v99_v3 = vsel %vm261_vm6, 0, %v260_v2 }
  0xae   :  { %v100_v6 = vsub.s32 32, %v99_v3  ;;  %v104_v7 = vsub.s32 4294967266, %v99_v3  ;;  %v101_v8 = vshll.u32 %v92_v62, %v99_v3 }
  0xb0   :  { %v102_v10 = vshrl.u32 %v84_v5, %v100_v6  ;;  %v105_v11 = vadd.s32 127, %v104_v7 }
  0xb2   :  { %v103_v12 = vor.u32 %v102_v10, %v101_v8  ;;  %v106_v13 = vshll.u32 %v105_v11, 23 }
  0xb4   :  { %v107_v14 = vor.u32 4788187, %v106_v13  ;;  %v110_v16 = vcvt.s32.f32 %v103_v12 }
  0xb6   :  { %v108_v15 = vand.u32 2147483647, %v107_v14 }
  0xb8   :  { %v111_v17 = vmul.f32 %v110_v16, %v108_v15 }
  0xba   :  { %v112_v18 = vxor.u32 2147483648, %v111_v17 }
  0xbc   :  { %v113_v20 = vsel %vm30_vm7, %v112_v18, %v111_v17 }
  0xbd   :  { %v116_v21 = vsel %vm29_vm8, %v336_v4, %v113_v20 }
  0xbe   :  { %280 = vcosq.f32 %v116_v21 }
  0xbf   :  { %282 = vsinq.f32 %v116_v21 }
  0xcb   :  { %v281_v27 = vpop.eup %280 }
  0xcc   :  { %v283_v28 = vpop.eup %282  ;;  %v128_v29 = vxor.u32 2147483648, %v281_v27 }
  0xcd   :  { %v125_v30 = vxor.u32 2147483648, %v283_v28 }
  0xce   :  { %v234_v31 = vsel %vm232_vm10, %v128_v29, %v283_v28  ;;  %v129_v9 = vsel %vm127_vm9, %v128_v29, %v283_v28 }
  0xcf   :  { %v231_v32 = vsel %vm229_vm13, %v281_v27, %v125_v30  ;;  %v126_v33 = vsel %vm124_vm12, %v281_v27, %v125_v30 }
  0xd0   :  { %v235_v34 = vsel %vm228_vm15, %v231_v32, %v234_v31  ;;  %v130_v35 = vsel %vm123_vm14, %v126_v33, %v129_v9 }
  0xd1   :  { %v236_v36 = vsel %vm120_vm0, nan, %v235_v34  ;;  %v131_v37 = vsel %vm120_vm0, nan, %v130_v35 }
  0xd2   :  { %238 = vrot.lane.b32.xlu0 %v236_v36, %s313_s0  ;;  %133 = vst.msk [vmem:[#allocation2] sm:$0xff] %vm132_vm11, %v131_v37 }
 0x144   :  { %v239_v38 = vpop.permute.xlu0 %238 }
 0x145   :  { %242 = vst.msk [vmem:[#allocation2] sm:$0xff] %vm241_vm1, %v239_v38 }
 0x146   :  { %295 = shalt.err (!%p292_p4)
}
 0x147   :  { %252 = dma.vmem_to_hbm [thread:$0]  %s250_s13, 128, %s363_s2, [#allocation3]  }
 0x148   :  { %304 = dma.done.wait [#allocation3], 128  }
 0x149   :  { %305 = vsyncadd [#allocation3], 4294967168 }
 0x14a   :  { %256 = vsyncpa [#allocation3], 1 }

</bundles_post_ra>
